<compile_context>
chip_gen: v7x
topology: tpu7x:2x2x1
jax: 0.10.0
libtpu: 0.0.40
codegen_flags: <defaults>
</compile_context>

<pallas_src>
import jax
import jax.numpy as jnp
from jax.experimental import pallas as pl
from jax.experimental.pallas import tpu as pltpu


def _round_up(x, m):
    return (x + m - 1) // m * m


def _pick_tile(total, candidates):
    """Largest candidate that divides `total` (total is a multiple of 128)."""
    for c in candidates:
        if c and c <= total and total % c == 0:
            return c
    return total


def activation_layer_kernel(x_ref, w_ref, b_ref, o_ref, acc_ref):
    # x_ref: (tm, tk)  activation tile, native dtype (cast to compute dtype here)
    # w_ref: (tk, tn)  folded weight tile (columns pre-scaled by activation_scaling)
    # b_ref: (1,  tn)  folded f32 bias (b_lin * scale + activation_bias)
    # o_ref: (tm, tn)  output tile
    # acc_ref: (tm, tn) f32 accumulator, resident across the k axis
    k = pl.program_id(2)

    @pl.when(k == 0)
    def _():
        acc_ref[...] = jnp.zeros_like(acc_ref)

    acc_ref[...] += jnp.dot(x_ref[...].astype(w_ref.dtype), w_ref[...],
                            preferred_element_type=jnp.float32)

    @pl.when(k == pl.num_programs(2) - 1)
    def _():
        o_ref[...] = (acc_ref[...] + b_ref[...]).astype(o_ref.dtype)


def prepare_folded_params(w, b_lin, act_scale, act_bias, *,
                          compute_dtype=jnp.bfloat16):
    """One-time folding of the scale/bias epilogue into the matmul operands.

    Depends only on parameters -> compute once and cache across forward calls
    (or wrap in jit so XLA constant-folds it).

    Returns:
      w_folded: (Hp, Hp) compute_dtype, padded  (W.T * activation_scaling)
      b_folded: (1, Hp)  f32, padded            (b_lin * scale + activation_bias)
    """
    H = w.shape[0]
    Hp = _round_up(H, 128)
    scale = act_scale.astype(jnp.float32)                     # (1, H)
    # Fold the scale along rows of W (out-features), then one transpose -> (K, N).
    w_eff = (w.astype(jnp.float32) * scale.T).T               # (H_in, H_out)
    b_eff = b_lin.astype(jnp.float32) * scale + act_bias.astype(jnp.float32)

    w_folded = jnp.zeros((Hp, Hp), compute_dtype).at[:H, :H].set(
        w_eff.astype(compute_dtype))
    b_folded = jnp.zeros((1, Hp), jnp.float32).at[:, :H].set(b_eff)
    return w_folded, b_folded


def _vmem_limit_bytes(per_step_bytes):
    try:
        info = pltpu.get_tpu_info()
        cap = getattr(info, "vmem_capacity_bytes", None) or (64 << 20)
    except Exception:
        cap = 64 << 20
    # 3x the double-buffered per-step need (headroom for pipeline internals),
    # floored at 32 MiB, never above ~72% of this generation's physical VMEM.
    return int(max(min(max(3 * per_step_bytes, 32 << 20), int(0.72 * cap)),
                   per_step_bytes))


def activation_layer_forward(x, w_folded, b_folded, *,
                             tm=512, tn=512, tk=1024, out_dtype=None):
    """ActivationLayer(layer_type='all', op_position='ffn') forward.

    x:        (B, S, H)
    w_folded: (Hp, Hp)  from prepare_folded_params (cached across calls)
    b_folded: (1, Hp)
    Returns (B, S, H):  (x @ w.T + b_lin) * act_scale + act_bias
    """
    B, S, H = x.shape
    out_dtype = out_dtype or x.dtype
    Hp = _round_up(H, 128)
    assert w_folded.shape == (Hp, Hp) and b_folded.shape == (1, Hp)

    x2d = x.reshape(B * S, H)
    M = B * S

    # Row tile: multiple of 16 (bf16 sublane packing); shrink if it would
    # create pathological row padding (e.g. M = tm + 1).
    tm = min(tm, _round_up(M, 16))
    while tm > 64 and (_round_up(M, tm) - M) > tm // 4:
        tm = max(16, _round_up(tm // 2, 16))
    Mp = _round_up(M, tm)

    # Hidden tiles: largest 128-multiples that divide Hp.
    tk = _pick_tile(Hp, (tk, 1024, 512, 256, 128))
    tn = _pick_tile(Hp, (tn, 512, 256, 128))
    # v7x megacore: with a single row block, split the j axis so both cores work.
    if Mp == tm and Hp // tn < 2 and Hp >= 256:
        tn = _pick_tile(Hp, (Hp // 2, 256, 128))

    # Pad activations only when required; keep the native dtype (the cast to the
    # MXU compute dtype happens per tile inside the kernel).
    if Mp == M and Hp == H:
        x_p = x2d
    else:
        x_p = jnp.zeros((Mp, Hp), x.dtype).at[:M, :H].set(x2d)

    grid = (Mp // tm, Hp // tn, Hp // tk)

    x_bytes = jnp.dtype(x.dtype).itemsize
    w_bytes = jnp.dtype(w_folded.dtype).itemsize
    o_bytes = jnp.dtype(out_dtype).itemsize
    per_step = (2 * (tm * tk * x_bytes + tk * tn * w_bytes + tn * 4
                     + tm * tn * o_bytes) + tm * tn * 4)
    vmem_limit = _vmem_limit_bytes(per_step)

    cost = pl.CostEstimate(
        flops=2 * Mp * Hp * Hp,
        transcendentals=0,
        bytes_accessed=((Mp // tm) * Hp * Hp * w_bytes      # weight re-streams
                        + (Hp // tn) * Mp * Hp * x_bytes    # activation re-streams
                        + Hp * 4 + Mp * Hp * o_bytes))

    out_p = pl.pallas_call(
        activation_layer_kernel,
        out_shape=jax.ShapeDtypeStruct((Mp, Hp), out_dtype),
        grid_spec=pltpu.PrefetchScalarGridSpec(
            num_scalar_prefetch=0,
            grid=grid,
            in_specs=[
                pl.BlockSpec((tm, tk), lambda i, j, k: (i, k)),   # activations
                pl.BlockSpec((tk, tn), lambda i, j, k: (k, j)),   # folded weight
                pl.BlockSpec((1, tn), lambda i, j, k: (0, j)),    # folded bias
            ],
            out_specs=pl.BlockSpec((tm, tn), lambda i, j, k: (i, j)),
            scratch_shapes=[pltpu.VMEM((tm, tn), jnp.float32)],
        ),
        compiler_params=pltpu.CompilerParams(
            dimension_semantics=("parallel", "parallel", "arbitrary"),
            vmem_limit_bytes=vmem_limit),
        cost_estimate=cost,
    )(x_p, w_folded, b_folded)

    out = out_p
    if Mp != M or Hp != H:
        out = out[:M, :H]
    return out.reshape(B, S, H)


if __name__ == "__main__":
    B, S, H = 2, 8, 32
    key = jax.random.PRNGKey(0)
    kx, kw, kb, ks, kd = jax.random.split(key, 5)

    # Synthetic parameters consistent with the module's __init__.
    x = jax.random.normal(kx, (B, S, H), dtype=jnp.float32)
    # update_layer = Linear(H, H): weight (H_out, H_in), bias (1, H_out)
    w = jax.random.normal(kw, (H, H), dtype=jnp.float32) * 0.05
    b_lin = jax.random.normal(kb, (1, H), dtype=jnp.float32) * 0.05
    # Non-trivial scale/bias so the epilogue folding is actually exercised.
    act_scale = 1.0 + 0.1 * jax.random.normal(ks, (1, H), dtype=jnp.float32)
    act_bias = 0.1 * jax.random.normal(kd, (1, H), dtype=jnp.float32)

    # One-time parameter folding (cache this across forward calls).
    w_folded, b_folded = prepare_folded_params(w, b_lin, act_scale, act_bias)

    out = activation_layer_forward(x, w_folded, b_folded)
    out = jax.block_until_ready(out)

    # Pure-JAX f32 reference of the forward semantics.
    ref = ((x.reshape(-1, H) @ w.T + b_lin) * act_scale + act_bias).reshape(B, S, H)
    assert out.shape == (B, S, H)
    # bf16 MXU compute with f32 accumulation -> relaxed tolerance.
    assert jnp.allclose(out, ref, atol=2e-2, rtol=2e-2), float(jnp.max(jnp.abs(out - ref)))

    print("KERNEL_OK")
</pallas_src>

<mosaic_0001>
module attributes {stable_mosaic.version = 11 : i64} {
  func.func @activation_layer_kernel(%arg0: i32, %arg1: i32, %arg2: i32, %arg3: memref<16x128xf32, #tpu.memory_space<vmem>>, %arg4: memref<128x128xbf16, #tpu.memory_space<vmem>>, %arg5: memref<1x128xf32, #tpu.memory_space<vmem>>, %arg6: memref<16x128xf32, #tpu.memory_space<vmem>>, %arg7: memref<16x128xf32, #tpu.memory_space<vmem>>) attributes {dimension_semantics = [#tpu.dimension_semantics<parallel>, #tpu.dimension_semantics<parallel>, #tpu.dimension_semantics<arbitrary>], iteration_bounds = array<i64: 1, 1, 1>, scalar_prefetch = 0 : i64, scratch_operands = 1 : i64, tpu.core_type = #tpu.core_type<tc>, window_params = [{transform_indices = @transform_0, window_bounds = array<i64: 16, 128>}, {transform_indices = @transform_1, window_bounds = array<i64: 128, 128>}, {transform_indices = @transform_2, window_bounds = array<i64: 1, 128>}, {transform_indices = @transform_3, window_bounds = array<i64: 16, 128>}]} {
    %c0_i32 = arith.constant 0 : i32
    %0 = arith.cmpi eq, %arg2, %c0_i32 : i32
    %1 = arith.extui %0 : i1 to i32
    %c0_i32_0 = arith.constant 0 : i32
    %2 = arith.cmpi ne, %1, %c0_i32_0 : i32
    scf.if %2 {
      %cst_10 = arith.constant 0.000000e+00 : f32
      %13 = vector.broadcast %cst_10 : f32 to vector<16x128xf32>
      %c0_11 = arith.constant 0 : index
      %c0_12 = arith.constant 0 : index
      %14 = vector.load %arg7[%c0_11, %c0_12] : memref<16x128xf32, #tpu.memory_space<vmem>>, vector<16x128xf32>
      tpu.vector_store %arg7[%c0_11, %c0_12], %13 {strides = array<i32>} : memref<16x128xf32, #tpu.memory_space<vmem>>, vector<16x128xf32>,
    } else {
    }
    %c0 = arith.constant 0 : index
    %c0_1 = arith.constant 0 : index
    %3 = vector.load %arg7[%c0, %c0_1] : memref<16x128xf32, #tpu.memory_space<vmem>>, vector<16x128xf32>
    %c0_2 = arith.constant 0 : index
    %c0_3 = arith.constant 0 : index
    %4 = vector.load %arg3[%c0_2, %c0_3] : memref<16x128xf32, #tpu.memory_space<vmem>>, vector<16x128xf32>
    %5 = arith.truncf %4 : vector<16x128xf32> to vector<16x128xbf16>
    %c0_4 = arith.constant 0 : index
    %c0_5 = arith.constant 0 : index
    %6 = vector.load %arg4[%c0_4, %c0_5] : memref<128x128xbf16, #tpu.memory_space<vmem>>, vector<128x128xbf16>
    %cst = arith.constant dense<0.000000e+00> : vector<16x128xf32>
    %7 = tpu.matmul %5, %6, %cst {dimension_numbers = #tpu.dot_dimension_numbers<[1], [0], [0], [1], [0, 0, 1, 1], [], []>} : vector<16x128xbf16>, vector<128x128xbf16>, vector<16x128xf32> -> vector<16x128xf32>
    %8 = arith.addf %3, %7 : vector<16x128xf32>
    %c0_6 = arith.constant 0 : index
    %c0_7 = arith.constant 0 : index
    %9 = vector.load %arg7[%c0_6, %c0_7] : memref<16x128xf32, #tpu.memory_space<vmem>>, vector<16x128xf32>
    tpu.vector_store %arg7[%c0_6, %c0_7], %8 {strides = array<i32>} : memref<16x128xf32, #tpu.memory_space<vmem>>, vector<16x128xf32>,
    %c0_i32_8 = arith.constant 0 : i32
    %10 = arith.cmpi eq, %arg2, %c0_i32_8 : i32
    %11 = arith.extui %10 : i1 to i32
    %c0_i32_9 = arith.constant 0 : i32
    %12 = arith.cmpi ne, %11, %c0_i32_9 : i32
    scf.if %12 {
      %c0_10 = arith.constant 0 : index
      %c0_11 = arith.constant 0 : index
      %13 = vector.load %arg7[%c0_10, %c0_11] : memref<16x128xf32, #tpu.memory_space<vmem>>, vector<16x128xf32>
      %c0_12 = arith.constant 0 : index
      %c0_13 = arith.constant 0 : index
      %14 = vector.load %arg5[%c0_12, %c0_13] : memref<1x128xf32, #tpu.memory_space<vmem>>, vector<1x128xf32>
      %15 = vector.broadcast %14 : vector<1x128xf32> to vector<16x128xf32>
      %16 = arith.addf %13, %15 : vector<16x128xf32>
      %c0_14 = arith.constant 0 : index
      %c0_15 = arith.constant 0 : index
      %17 = vector.load %arg6[%c0_14, %c0_15] : memref<16x128xf32, #tpu.memory_space<vmem>>, vector<16x128xf32>
      tpu.vector_store %arg6[%c0_14, %c0_15], %16 {strides = array<i32>} : memref<16x128xf32, #tpu.memory_space<vmem>>, vector<16x128xf32>,
    } else {
    }
    return
  }
  func.func @transform_0(%arg0: i32, %arg1: i32, %arg2: i32) -> (i32, i32) {
    %c0_i32 = arith.constant 0 : i32
    return %arg0, %arg2 : i32, i32
  }
  func.func @transform_1(%arg0: i32, %arg1: i32, %arg2: i32) -> (i32, i32) {
    %c0_i32 = arith.constant 0 : i32
    return %arg2, %arg1 : i32, i32
  }
  func.func @transform_2(%arg0: i32, %arg1: i32, %arg2: i32) -> (i32, i32) {
    %c0_i32 = arith.constant 0 : i32
    %c0_i32_0 = arith.constant 0 : i32
    return %c0_i32, %arg1 : i32, i32
  }
  func.func @transform_3(%arg0: i32, %arg1: i32, %arg2: i32) -> (i32, i32) {
    %c0_i32 = arith.constant 0 : i32
    return %arg0, %arg1 : i32, i32
  }
}

</mosaic_0001>

<bundles_post_ra>
// kernel: tpu_custom_call.1
= control target key start
LH: loop header
LB: loop body
LE: loop exit
PB: predicated region body
PF: predicated region fallthrough
CT: control target
= control target key end

     0   :  { %8 = vsyncpa [#allocation4], 0  ;;  %s399_s0 = inlined_call_operand.hbm [shape: f32[16,128], index: 0, kind: input, shape index: {}]   ;;  %s400_s1 = inlined_call_operand.hbm [shape: bf16[128,128], index: 1, kind: input, shape index: {}]   ;;  %s401_s2 = inlined_call_operand.vmem [shape: f32[1,128], index: 2, kind: input, shape index: {}]   ;;  %s402_s3 = inlined_call_operand.hbm [shape: f32[16,128], index: 3, kind: output, shape index: {}]  }
   0x1   :  { %9 = vsyncpa [#allocation7], 0 }
   0x2   :  { %10 = vsyncpa [#allocation5], 0  ;;  %s325_s12 = smov [#allocation3]   ;;  %s253_s16 = scalar_lea.hbm %s399_s0, 256 }
   0x3   :  { %s16_s13 = sshll.u32 %s325_s12, 4  ;;  %p254_p0 = scmp.ne.s32.totalorder %s399_s0, %s253_s16  ;;  %s17_s13 = int_to_ptr.vmem [resolvable:$true] %s16_s13 }
   0x4   :  { %p257_p1 = scmp.lt.u32.totalorder %s253_s16, %s399_s0 }
   0x6   :  { %p259_p2 = pnand %p257_p1, %p254_p0 }
   0x8   :  { %262 = shalt.err (!%p259_p2)
}
   0x9   :  { %s263_s21 = scalar_lea.vmem %s17_s13, 256  ;;  %p268_p4 = scmp.lt.s32.totalorder %s17_s13, %s17_s13 }
   0xa   :  { %p264_p3 = scmp.ne.s32.totalorder %s17_s13, %s263_s21  ;;  %p269_p5 = scmp.lt.s32.totalorder %s263_s21, %s263_s21 }
   0xc   :  { %p270_p6 = por %p269_p5, %p268_p4 }
   0xe   :  { %p271_p7 = pnand %p270_p6, %p264_p3 }
  0x10   :  { %274 = shalt.err (!%p271_p7)
}
  0x11   :  { %s326_s22 = smov 128   ;;  %s327_s23 = smov 8  }
  0x12   :  { %22 = dma.hbm_to_vmem [thread:$0]  %s399_s0, 256, %s17_s13, [#allocation4], %s326_s22, %s326_s22, %s327_s23  }
  0x13   :  { %s328_s26 = smov [#allocation6]   ;;  %s275_s30 = scalar_lea.hbm %s400_s1, 1024 }
  0x14   :  { %s28_s27 = sshll.u32 %s328_s26, 4  ;;  %p276_p8 = scmp.ne.s32.totalorder %s400_s1, %s275_s30  ;;  %s29_s27 = int_to_ptr.vmem [resolvable:$true] %s28_s27 }
  0x15   :  { %p279_p9 = scmp.lt.u32.totalorder %s275_s30, %s400_s1 }
  0x17   :  { %p281_p10 = pnand %p279_p9, %p276_p8 }
  0x19   :  { %284 = shalt.err (!%p281_p10)
}
  0x1a   :  { %s285_s8 = scalar_lea.vmem %s29_s27, 1024  ;;  %p290_p12 = scmp.lt.s32.totalorder %s29_s27, %s29_s27 }
  0x1b   :  { %p286_p11 = scmp.ne.s32.totalorder %s29_s27, %s285_s8  ;;  %p291_p13 = scmp.lt.s32.totalorder %s285_s8, %s285_s8 }
  0x1d   :  { %p292_p0 = por %p291_p13, %p290_p12 }
  0x1f   :  { %p293_p1 = pnand %p292_p0, %p286_p11 }
  0x21   :  { %296 = shalt.err (!%p293_p1)
}
  0x22   :  { %s329_s0 = smov 64   ;;  %s330_s9 = smov 4  }
  0x23   :  { %34 = dma.hbm_to_vmem [thread:$0]  %s400_s1, 1024, %s29_s27, [#allocation7], %s329_s0, %s329_s0, %s330_s9  }
  0x24   :  { %319 = dma.done.wait [#allocation4], 256  }
  0x25   :  { %320 = vsyncadd [#allocation4], 4294967040 }
  0x26   :  { %321 = dma.done.wait [#allocation7], 1024  }
  0x27   :  { %322 = vsyncadd [#allocation7], 4294966272  ;;  %v331_v0 = vmov 0.0   ;;  %vm332_vm0 = vmmov 0   ;;  %v245_v1 = vld [vmem:[#allocation6] sm:$0xff]   ;;  %v246_v2 = vld [vmem:[#allocation6 + $0x8] sm:$0xff]  }
  0x28   :  { %216 = vmatprep.subr.bf16.mxu0 %v331_v0  ;;  %232 = vmatprep.mubr.msk.bf16.mxu0 %vm332_vm0, %v331_v0  ;;  %v247_v3 = vld [vmem:[#allocation6 + $0x10] sm:$0xff]   ;;  %v248_v4 = vld [vmem:[#allocation6 + $0x18] sm:$0xff]   ;;  %v249_v5 = vld [vmem:[#allocation6 + $0x20] sm:$0xff]   ;;  %s333_s13 = smov [#allocation8]  }
  0x29   :  { %217 = vmatpush3.bf16.msra.mxu0 %v245_v1  ;;  %v250_v6 = vld [vmem:[#allocation6 + $0x28] sm:$0xff]   ;;  %v251_v7 = vld [vmem:[#allocation6 + $0x30] sm:$0xff]   ;;  %v252_v8 = vld [vmem:[#allocation6 + $0x38] sm:$0xff]   ;;  %s185_s14 = sshll.u32 %s333_s13, 4  ;;  %s186_s14 = int_to_ptr.vmem [resolvable:$true] %s185_s14 }
  0x2a   :  { %218 = vmatprep.subr.bf16.mxu0 %v331_v0  ;;  %v52_v9 = vld [vmem:[#allocation3] sm:$0xff]  ;;  %v53_v10 = vld [vmem:[#allocation3 + $0x8] sm:$0xff]  ;;  %s297_s15 = scalar_lea.vmem %s186_s14, 256  ;;  %p302_p3 = scmp.lt.s32.totalorder %s186_s14, %s186_s14 }
  0x2b   :  { %v54_v11 = vpack.c.bf16 %v53_v10, %v52_v9  ;;  %v206_v12 = vld [vmem:[%s401_s2] ss:$0 sm:$0xff]  ;;  %p298_p2 = scmp.ne.s32.totalorder %s186_s14, %s297_s15  ;;  %p303_p4 = scmp.lt.s32.totalorder %s297_s15, %s297_s15 }
  0x2d   :  { %219 = vmatpush3.bf16.msra.mxu0 %v246_v2  ;;  %p304_p5 = por %p303_p4, %p302_p3 }
  0x2e   :  { %220 = vmatprep.subr.bf16.mxu0 %v331_v0 }
  0x2f   :  { %p305_p6 = pnand %p304_p5, %p298_p2 }
  0x31   :  { %221 = vmatpush3.bf16.msra.mxu0 %v247_v3 }
  0x32   :  { %222 = vmatprep.subr.bf16.mxu0 %v331_v0 }
  0x35   :  { %223 = vmatpush3.bf16.msra.mxu0 %v248_v4 }
  0x36   :  { %224 = vmatprep.subr.bf16.mxu0 %v331_v0 }
  0x39   :  { %225 = vmatpush3.bf16.msra.mxu0 %v249_v5 }
  0x3a   :  { %226 = vmatprep.subr.bf16.mxu0 %v331_v0 }
  0x3d   :  { %227 = vmatpush3.bf16.msra.mxu0 %v250_v6 }
  0x3e   :  { %228 = vmatprep.subr.bf16.mxu0 %v331_v0 }
  0x41   :  { %229 = vmatpush3.bf16.msra.mxu0 %v251_v7 }
  0x42   :  { %230 = vmatprep.subr.bf16.mxu0 %v331_v0 }
  0x45   :  { %231 = vmatpush3.bf16.msra.mxu0 %v252_v8 }
  0x48   :  { %233 = vmatmul.mubr.bf16.vlgmr.msra.gmra.mrb[0].mxu0 %v54_v11 }
 0x11b   :  { %v153_v13 = vpop.f32.mrb[0].mxu0 }
 0x11c   :  { %v176_v14 = vadd.f32 %v206_v12, %v153_v13  ;;  %v234_v15 = vpop.f32.mrb[1].mxu0 }
 0x11d   :  { %v156_v16 = vpop.f32.mrb[2].mxu0 }
 0x11e   :  { %178 = vst [vmem:[#allocation8] sm:$0xff] %v176_v14  ;;  %v177_v17 = vadd.f32 %v206_v12, %v156_v16  ;;  %v235_v18 = vpop.f32.mrb[3].mxu0 }
 0x120   :  { %179 = vst [vmem:[#allocation8 + $0x8] sm:$0xff] %v177_v17 }
 0x121   :  { %308 = shalt.err (!%p305_p6)
}
 0x122   :  { %s309_s17 = scalar_lea.hbm %s402_s3, 256 }
 0x123   :  { %p310_p7 = scmp.ne.s32.totalorder %s402_s3, %s309_s17  ;;  %p313_p8 = scmp.lt.u32.totalorder %s309_s17, %s402_s3 }
 0x125   :  { %p315_p9 = pnand %p313_p8, %p310_p7 }
 0x127   :  { %318 = shalt.err (!%p315_p9)
}
 0x128   :  { %191 = dma.vmem_to_hbm [thread:$0]  %s186_s14, 256, %s402_s3, [#allocation5], %s326_s22, %s326_s22, %s327_s23  }
 0x129   :  { %323 = dma.done.wait [#allocation5], 256  }
 0x12a   :  { %324 = vsyncadd [#allocation5], 4294967040 }
 0x12b   :  { %195 = vsyncpa [#allocation4], 1 }
 0x12c   :  { %196 = vsyncpa [#allocation7], 1 }
 0x12d   :  { %197 = vsyncpa [#allocation5], 1 }

</bundles_post_ra>
